<compile_context>
chip_gen: v7x
topology: tpu7x:2x2x1
jax: 0.10.0
libtpu: 0.0.40
codegen_flags: <defaults>
</compile_context>

<pallas_src>
import functools

import jax
import jax.numpy as jnp
from jax.experimental import pallas as pl
from jax.experimental.pallas import tpu as pltpu

LANE = 128  # TPU lane width


# ----------------------------------------------------------------------------
# Fused kernel: out = relu(x @ W1 + b1) @ W2 + b2   (all tiles stay in VMEM)
# ----------------------------------------------------------------------------
def mlp_kernel(x_ref, w1_ref, b1_ref, w2_ref, b2_ref, o_ref):
    # x_ref : (TM, D_in)   batch-row tile
    # w1_ref: (D_in, Hp)   fc1 weight, (in, out) layout, lane-padded
    # b1_ref: (1, Hp)      fc1 bias, lane-padded
    # w2_ref: (Hp, Cp)     fc2 weight, (in, out) layout, lane-padded
    # b2_ref: (1, Cp)      fc2 bias, lane-padded
    # o_ref : (TM, Cp)     lane-dense output tile
    h = jnp.dot(x_ref[...], w1_ref[...], preferred_element_type=jnp.float32)
    h = jnp.maximum(h + b1_ref[...], 0.0)          # ReLU, never leaves VMEM
    y = jnp.dot(h, w2_ref[...], preferred_element_type=jnp.float32)
    o_ref[...] = (y + b2_ref[...]).astype(o_ref.dtype)


# ----------------------------------------------------------------------------
# One-time parameter prep (hoisted out of the per-call path)
# ----------------------------------------------------------------------------
def _pad_axis_to(a, target, axis):
    pad = target - a.shape[axis]
    if pad <= 0:
        return a
    widths = [(0, 0)] * a.ndim
    widths[axis] = (0, pad)
    return jnp.pad(a, widths)


def prepare_params(w1, b1, w2, b2):
    """Transpose PyTorch-layout (out,in) weights to (in,out) and zero-pad the
    lane (output) dims of both layers to multiples of 128.  Done ONCE so no
    transpose/pad ops run on the per-forward path."""
    H, _ = w1.shape
    C = w2.shape[0]
    Hp = pl.cdiv(H, LANE) * LANE
    Cp = pl.cdiv(C, LANE) * LANE

    w1_t = _pad_axis_to(jnp.asarray(w1, jnp.float32).T, Hp, axis=1)            # (D_in, Hp)
    b1_p = _pad_axis_to(jnp.asarray(b1, jnp.float32).reshape(1, H), Hp, axis=1)  # (1, Hp)
    w2_t = jnp.asarray(w2, jnp.float32).T                                      # (H, C)
    w2_t = _pad_axis_to(_pad_axis_to(w2_t, Cp, axis=1), Hp, axis=0)            # (Hp, Cp)
    b2_p = _pad_axis_to(jnp.asarray(b2, jnp.float32).reshape(1, C), Cp, axis=1)  # (1, Cp)
    return {"w1": w1_t, "b1": b1_p, "w2": w2_t, "b2": b2_p}


# ----------------------------------------------------------------------------
# Fused forward (jitted; one pallas_call, one grid step for B <= 512)
# ----------------------------------------------------------------------------
@functools.partial(jax.jit, static_argnames=("num_classes",))
def mlp_forward(x, w1_t, b1_p, w2_t, b2_p, *, num_classes):
    B, D_in = x.shape
    Hp = w1_t.shape[1]
    Cp = w2_t.shape[1]

    # Whole batch in one grid step for small/medium B; 512-row tiles beyond
    # that.  If B > 512 and not a multiple of tm, the padded rows of the last
    # tile compute garbage but the masked output write keeps results correct.
    tm = min(B, 512)
    grid = (pl.cdiv(B, tm),)

    flops = 2 * B * (D_in * Hp + Hp * Cp)
    bytes_accessed = 4 * (B * D_in + D_in * Hp + Hp + Hp * Cp + Cp + B * Cp)

    out_padded = pl.pallas_call(
        mlp_kernel,
        out_shape=jax.ShapeDtypeStruct((B, Cp), x.dtype),
        grid=grid,
        in_specs=[
            pl.BlockSpec((tm, D_in), lambda i: (i, 0)),   # batch-row tile of x
            pl.BlockSpec((D_in, Hp), lambda i: (0, 0)),   # fc1 weight, resident
            pl.BlockSpec((1, Hp),    lambda i: (0, 0)),   # fc1 bias,   resident
            pl.BlockSpec((Hp, Cp),   lambda i: (0, 0)),   # fc2 weight, resident
            pl.BlockSpec((1, Cp),    lambda i: (0, 0)),   # fc2 bias,   resident
        ],
        out_specs=pl.BlockSpec((tm, Cp), lambda i: (i, 0)),
        # Harmless at grid=(1,); lets batch tiles shard across v7x cores when
        # B is large enough for >=128-row lane-dense tiles per core.
        compiler_params=pltpu.CompilerParams(
            dimension_semantics=("parallel",)),
        cost_estimate=pl.CostEstimate(
            flops=flops, transcendentals=0, bytes_accessed=bytes_accessed),
    )(x, w1_t, b1_p, w2_t, b2_p)

    return out_padded[:, :num_classes]


# ----------------------------------------------------------------------------
# Deterministic parameter construction (mirrors nn.Linear default init)
# ----------------------------------------------------------------------------
def make_linear_params(key, in_features, out_features):
    kw, kb = jax.random.split(key)
    bound = 1.0 / jnp.sqrt(float(in_features))
    w = jax.random.uniform(kw, (out_features, in_features), jnp.float32,
                           minval=-bound, maxval=bound)
    b = jax.random.uniform(kb, (out_features,), jnp.float32,
                           minval=-bound, maxval=bound)
    return w, b


# ----------------------------------------------------------------------------
# Pure-JAX reference for correctness check
# ----------------------------------------------------------------------------
def mlp_reference(x, w1, b1, w2, b2):
    h = jnp.maximum(x @ w1.T + b1, 0.0)
    return h @ w2.T + b2


# ----------------------------------------------------------------------------
if __name__ == "__main__":
    batch = 16
    input_size = 16
    hidden_size = 32
    num_classes = 10

    key = jax.random.PRNGKey(0)
    kx, k1, k2 = jax.random.split(key, 3)
    x = jax.random.normal(kx, (batch, input_size), jnp.float32)
    w1, b1 = make_linear_params(k1, input_size, hidden_size)
    w2, b2 = make_linear_params(k2, hidden_size, num_classes)

    # One-time prep: transpose + lane-pad weights/biases (hoisted out of the
    # per-forward path).
    params = prepare_params(w1, b1, w2, b2)

    out = jax.block_until_ready(
        mlp_forward(x, params["w1"], params["b1"], params["w2"], params["b2"],
                    num_classes=num_classes))
    assert out.shape == (batch, num_classes), out.shape

    ref = jax.block_until_ready(mlp_reference(x, w1, b1, w2, b2))
    assert jnp.allclose(out, ref, atol=1e-5, rtol=1e-5), \
        float(jnp.max(jnp.abs(out - ref)))

    print("KERNEL_OK")
</pallas_src>

<mosaic_0001>
module attributes {stable_mosaic.version = 11 : i64} {
  func.func @mlp_kernel(%arg0: i32, %arg1: memref<16x16xf32, #tpu.memory_space<vmem>>, %arg2: memref<16x128xf32, #tpu.memory_space<vmem>>, %arg3: memref<1x128xf32, #tpu.memory_space<vmem>>, %arg4: memref<128x128xf32, #tpu.memory_space<vmem>>, %arg5: memref<1x128xf32, #tpu.memory_space<vmem>>, %arg6: memref<16x128xf32, #tpu.memory_space<vmem>>) attributes {dimension_semantics = [#tpu.dimension_semantics<parallel>], iteration_bounds = array<i64: 1>, scalar_prefetch = 0 : i64, scratch_operands = 0 : i64, tpu.core_type = #tpu.core_type<tc>, window_params = [{transform_indices = @transform_0, window_bounds = array<i64: 16, 16>}, {pipeline_mode = #tpu.pipeline_mode<synchronous>, transform_indices = @transform_1, window_bounds = array<i64: 16, 128>}, {pipeline_mode = #tpu.pipeline_mode<synchronous>, transform_indices = @transform_2, window_bounds = array<i64: 1, 128>}, {pipeline_mode = #tpu.pipeline_mode<synchronous>, transform_indices = @transform_3, window_bounds = array<i64: 128, 128>}, {pipeline_mode = #tpu.pipeline_mode<synchronous>, transform_indices = @transform_4, window_bounds = array<i64: 1, 128>}, {transform_indices = @transform_5, window_bounds = array<i64: 16, 128>}]} {
    %c0 = arith.constant 0 : index
    %c0_0 = arith.constant 0 : index
    %0 = vector.load %arg1[%c0, %c0_0] : memref<16x16xf32, #tpu.memory_space<vmem>>, vector<16x16xf32>
    %c0_1 = arith.constant 0 : index
    %c0_2 = arith.constant 0 : index
    %1 = vector.load %arg2[%c0_1, %c0_2] : memref<16x128xf32, #tpu.memory_space<vmem>>, vector<16x128xf32>
    %cst = arith.constant dense<0.000000e+00> : vector<16x128xf32>
    %2 = tpu.matmul %0, %1, %cst {dimension_numbers = #tpu.dot_dimension_numbers<[1], [0], [0], [1], [0, 0, 1, 1], [], []>} : vector<16x16xf32>, vector<16x128xf32>, vector<16x128xf32> -> vector<16x128xf32>
    %c0_3 = arith.constant 0 : index
    %c0_4 = arith.constant 0 : index
    %3 = vector.load %arg3[%c0_3, %c0_4] : memref<1x128xf32, #tpu.memory_space<vmem>>, vector<1x128xf32>
    %4 = vector.broadcast %3 : vector<1x128xf32> to vector<16x128xf32>
    %5 = arith.addf %2, %4 : vector<16x128xf32>
    %cst_5 = arith.constant 0.000000e+00 : f32
    %6 = vector.broadcast %cst_5 : f32 to vector<16x128xf32>
    %7 = arith.maximumf %5, %6 : vector<16x128xf32>
    %c0_6 = arith.constant 0 : index
    %c0_7 = arith.constant 0 : index
    %8 = vector.load %arg4[%c0_6, %c0_7] : memref<128x128xf32, #tpu.memory_space<vmem>>, vector<128x128xf32>
    %cst_8 = arith.constant dense<0.000000e+00> : vector<16x128xf32>
    %9 = tpu.matmul %7, %8, %cst_8 {dimension_numbers = #tpu.dot_dimension_numbers<[1], [0], [0], [1], [0, 0, 1, 1], [], []>} : vector<16x128xf32>, vector<128x128xf32>, vector<16x128xf32> -> vector<16x128xf32>
    %c0_9 = arith.constant 0 : index
    %c0_10 = arith.constant 0 : index
    %10 = vector.load %arg5[%c0_9, %c0_10] : memref<1x128xf32, #tpu.memory_space<vmem>>, vector<1x128xf32>
    %11 = vector.broadcast %10 : vector<1x128xf32> to vector<16x128xf32>
    %12 = arith.addf %9, %11 : vector<16x128xf32>
    %c0_11 = arith.constant 0 : index
    %c0_12 = arith.constant 0 : index
    %13 = vector.load %arg6[%c0_11, %c0_12] : memref<16x128xf32, #tpu.memory_space<vmem>>, vector<16x128xf32>
    tpu.vector_store %arg6[%c0_11, %c0_12], %12 {strides = array<i32>} : memref<16x128xf32, #tpu.memory_space<vmem>>, vector<16x128xf32>,
    return
  }
  func.func @transform_0(%arg0: i32) -> (i32, i32) {
    %c0_i32 = arith.constant 0 : i32
    %c0_i32_0 = arith.constant 0 : i32
    return %arg0, %c0_i32 : i32, i32
  }
  func.func @transform_1(%arg0: i32) -> (i32, i32) {
    %c0_i32 = arith.constant 0 : i32
    %c0_i32_0 = arith.constant 0 : i32
    %c0_i32_1 = arith.constant 0 : i32
    return %c0_i32, %c0_i32_0 : i32, i32
  }
  func.func @transform_2(%arg0: i32) -> (i32, i32) {
    %c0_i32 = arith.constant 0 : i32
    %c0_i32_0 = arith.constant 0 : i32
    %c0_i32_1 = arith.constant 0 : i32
    return %c0_i32, %c0_i32_0 : i32, i32
  }
  func.func @transform_3(%arg0: i32) -> (i32, i32) {
    %c0_i32 = arith.constant 0 : i32
    %c0_i32_0 = arith.constant 0 : i32
    %c0_i32_1 = arith.constant 0 : i32
    return %c0_i32, %c0_i32_0 : i32, i32
  }
  func.func @transform_4(%arg0: i32) -> (i32, i32) {
    %c0_i32 = arith.constant 0 : i32
    %c0_i32_0 = arith.constant 0 : i32
    %c0_i32_1 = arith.constant 0 : i32
    return %c0_i32, %c0_i32_0 : i32, i32
  }
  func.func @transform_5(%arg0: i32) -> (i32, i32) {
    %c0_i32 = arith.constant 0 : i32
    %c0_i32_0 = arith.constant 0 : i32
    return %arg0, %c0_i32 : i32, i32
  }
}

</mosaic_0001>

<bundles_post_ra>
// kernel: mlp_forward.1
= control target key start
LH: loop header
LB: loop body
LE: loop exit
PB: predicated region body
PF: predicated region fallthrough
CT: control target
= control target key end

     0   :  { %10 = vsyncpa [#allocation3], 0  ;;  %s590_s0 = inlined_call_operand.hbm [shape: f32[16,16], index: 0, kind: input, shape index: {}]   ;;  %s591_s1 = inlined_call_operand.hbm [shape: f32[16,128], index: 1, kind: input, shape index: {}]   ;;  %s592_s2 = inlined_call_operand.vmem [shape: f32[1,128], index: 2, kind: input, shape index: {}]   ;;  %s593_s3 = inlined_call_operand.hbm [shape: f32[128,128], index: 3, kind: input, shape index: {}]   ;;  %s594_s4 = inlined_call_operand.vmem [shape: f32[1,128], index: 4, kind: input, shape index: {}]   ;;  %s595_s5 = inlined_call_operand.hbm [shape: f32[16,128], index: 5, kind: output, shape index: {}]  }
   0x1   :  { %11 = vsyncpa [#allocation6], 0 }
   0x2   :  { %12 = vsyncpa [#allocation4], 0  ;;  %s479_s18 = smov [#allocation5]   ;;  %s480_s20 = smov [#allocation2]  }
   0x3   :  { %s30_s19 = sshll.u32 %s479_s18, 4  ;;  %s18_s21 = sshll.u32 %s480_s20, 4  ;;  %s31_s19 = int_to_ptr.vmem [resolvable:$true] %s30_s19  ;;  %s515_s21 = int_to_ptr.vmem [resolvable:$true] %s18_s21 }
   0x4   :  { %s385_s24 = scalar_lea.hbm %s591_s1, 256 }
   0x5   :  { %p386_p0 = scmp.ne.s32.totalorder %s591_s1, %s385_s24  ;;  %p389_p1 = scmp.lt.u32.totalorder %s385_s24, %s591_s1 }
   0x7   :  { %p391_p2 = pnand %p389_p1, %p386_p0 }
   0x9   :  { %394 = shalt.err (!%p391_p2)
}
   0xa   :  { %s395_s29 = scalar_lea.vmem %s31_s19, 256  ;;  %p400_p4 = scmp.lt.s32.totalorder %s31_s19, %s31_s19 }
   0xb   :  { %p396_p3 = scmp.ne.s32.totalorder %s31_s19, %s395_s29  ;;  %p401_p5 = scmp.lt.s32.totalorder %s395_s29, %s395_s29 }
   0xd   :  { %p402_p6 = por %p401_p5, %p400_p4 }
   0xf   :  { %p403_p7 = pnand %p402_p6, %p396_p3 }
  0x11   :  { %406 = shalt.err (!%p403_p7)
}
  0x12   :  { %s481_s30 = smov 128   ;;  %s482_s6 = smov 8  }
  0x13   :  { %36 = dma.hbm_to_vmem [thread:$0]  %s591_s1, 256, %s31_s19, [#allocation6], %s481_s30, %s481_s30, %s482_s6  }
  0x14   :  { %s407_s11 = scalar_lea.hbm %s590_s0, 256 }
  0x15   :  { %p408_p8 = scmp.ne.s32.totalorder %s590_s0, %s407_s11  ;;  %p411_p9 = scmp.lt.u32.totalorder %s407_s11, %s590_s0 }
  0x17   :  { %p413_p10 = pnand %p411_p9, %p408_p8 }
  0x19   :  { %416 = shalt.err (!%p413_p10)
}
  0x1a   :  { %s417_s16 = scalar_lea.vmem %s515_s21, 256  ;;  %p422_p12 = scmp.lt.s32.totalorder %s515_s21, %s515_s21 }
  0x1b   :  { %p418_p11 = scmp.ne.s32.totalorder %s515_s21, %s417_s16  ;;  %p423_p13 = scmp.lt.s32.totalorder %s417_s16, %s417_s16 }
  0x1d   :  { %p424_p0 = por %p423_p13, %p422_p12 }
  0x1f   :  { %p425_p1 = pnand %p424_p0, %p418_p11 }
  0x21   :  { %428 = shalt.err (!%p425_p1)
}
  0x22   :  { %24 = dma.hbm_to_vmem [thread:$0]  %s590_s0, 256, %s515_s21, [#allocation3], %s481_s30, %s481_s30, %s482_s6  }
  0x23   :  { %s483_s18 = smov [#allocation7]   ;;  %s429_s23 = scalar_lea.hbm %s593_s3, 2048 }
  0x24   :  { %s44_s19 = sshll.u32 %s483_s18, 4  ;;  %p430_p2 = scmp.ne.s32.totalorder %s593_s3, %s429_s23  ;;  %s45_s19 = int_to_ptr.vmem [resolvable:$true] %s44_s19 }
  0x25   :  { %p433_p3 = scmp.lt.u32.totalorder %s429_s23, %s593_s3 }
  0x27   :  { %p435_p4 = pnand %p433_p3, %p430_p2 }
  0x29   :  { %438 = shalt.err (!%p435_p4)
}
  0x2a   :  { %s439_s28 = scalar_lea.vmem %s45_s19, 2048  ;;  %p444_p6 = scmp.lt.s32.totalorder %s45_s19, %s45_s19 }
  0x2b   :  { %p440_p5 = scmp.ne.s32.totalorder %s45_s19, %s439_s28  ;;  %p445_p7 = scmp.lt.s32.totalorder %s439_s28, %s439_s28 }
  0x2d   :  { %p446_p8 = por %p445_p7, %p444_p6 }
  0x2f   :  { %p447_p9 = pnand %p446_p8, %p440_p5 }
  0x31   :  { %450 = shalt.err (!%p447_p9)
}
  0x32   :  { %50 = dma.hbm_to_vmem [thread:$0]  %s593_s3, 2048, %s45_s19, [#allocation6], %s481_s30, %s481_s30, %s482_s6  }
  0x33   :  { %473 = dma.done.wait [#allocation3], 256  }
  0x34   :  { %474 = vsyncadd [#allocation3], 4294967040 }
  0x35   :  { %475 = dma.done.wait [#allocation6], 2304  }
  0x36   :  { %476 = vsyncadd [#allocation6], 4294964992  ;;  %vm73_vm0 = vcmask 130048   ;;  %v64_v0 = vld [vmem:[#allocation5] sm:$0xff]  ;;  %v65_v1 = vld [vmem:[#allocation5 + $0x8] sm:$0xff]  ;;  %s484_s9 = smov [#allocation8]  }
  0x37   :  { %v62_v2 = vld [vmem:[#allocation2] sm:$0xff]  ;;  %v343_v3 = vpack.c.bf16 %v65_v1, %v64_v0  ;;  %v158_v5 = vld [vmem:[#allocation7 + $0x8] sm:$0xff]  ;;  %v159_v7 = vld [vmem:[#allocation7 + $0x10] sm:$0xff]  ;;  %s262_s10 = sshll.u32 %s484_s9, 4  ;;  %s263_s10 = int_to_ptr.vmem [resolvable:$true] %s262_s10 }
  0x38   :  { %305 = vmatprep.mubr.msk.f32.mxu0 %vm73_vm0, %v62_v2  ;;  %v157_v4 = vld [vmem:[#allocation7] sm:$0xff]  ;;  %v160_v8 = vld [vmem:[#allocation7 + $0x18] sm:$0xff]  ;;  %v162_v11 = vld [vmem:[#allocation7 + $0x28] sm:$0xff]  ;;  %p456_p11 = scmp.lt.s32.totalorder %s263_s10, %s263_s10 }
  0x39   :  { %v347_v6 = vpack.c.bf16 %v158_v5, %v157_v4  ;;  %344 = vmatprep.subr.bf16.mxu0 %v343_v3  ;;  %v351_v9 = vpack.c.bf16 %v160_v8, %v159_v7  ;;  %v161_v10 = vld [vmem:[#allocation7 + $0x20] sm:$0xff]  ;;  %v63_v12 = vld [vmem:[#allocation2 + $0x8] sm:$0xff]  ;;  %v163_v14 = vld [vmem:[#allocation7 + $0x30] sm:$0xff] }
  0x3a   :  { %346 = vmatpush3.bf16.msra.mxu0 %v343_v3  ;;  %v355_v13 = vpack.c.bf16 %v162_v11, %v161_v10  ;;  %v164_v15 = vld [vmem:[#allocation7 + $0x38] sm:$0xff]  ;;  %v165_v17 = vld [vmem:[#allocation7 + $0x40] sm:$0xff]  ;;  %v166_v18 = vld [vmem:[#allocation7 + $0x48] sm:$0xff] }
  0x3b   :  { %348 = vmatprep.subr.bf16.mxu1 %v347_v6  ;;  %v359_v16 = vpack.c.bf16 %v164_v15, %v163_v14  ;;  %v363_v19 = vpack.c.bf16 %v166_v18, %v165_v17  ;;  %v167_v20 = vld [vmem:[#allocation7 + $0x50] sm:$0xff]  ;;  %v168_v21 = vld [vmem:[#allocation7 + $0x58] sm:$0xff]  ;;  %v169_v23 = vld [vmem:[#allocation7 + $0x60] sm:$0xff] }
  0x3c   :  { %350 = vmatpush3.bf16.msra.mxu1 %v347_v6  ;;  %v367_v22 = vpack.c.bf16 %v168_v21, %v167_v20  ;;  %v170_v24 = vld [vmem:[#allocation7 + $0x68] sm:$0xff]  ;;  %v171_v26 = vld [vmem:[#allocation7 + $0x70] sm:$0xff]  ;;  %v172_v27 = vld [vmem:[#allocation7 + $0x78] sm:$0xff] }
  0x3d   :  { %352 = vmatprep.subr.bf16.mxu1 %v351_v9  ;;  %306 = vmatmul.mubr.msk.f32.vlgmr.msra.gmra.mrb[0].mxu0 %vm73_vm0, %v63_v12  ;;  %v371_v25 = vpack.c.bf16 %v170_v24, %v169_v23  ;;  %v375_v28 = vpack.c.bf16 %v172_v27, %v171_v26  ;;  %v275_v29 = vld [vmem:[%s592_s2] ss:$0 sm:$0xff]  ;;  %s451_s2 = scalar_lea.vmem %s263_s10, 256 }
  0x3e   :  { %v278_v36 = vld [vmem:[%s594_s4] ss:$0 sm:$0xff]  ;;  %p452_p10 = scmp.ne.s32.totalorder %s263_s10, %s451_s2  ;;  %p457_p12 = scmp.lt.s32.totalorder %s451_s2, %s451_s2 }
  0x40   :  { %354 = vmatpush3.bf16.msra.mxu1 %v351_v9  ;;  %p458_p13 = por %p457_p12, %p456_p11 }
  0x41   :  { %356 = vmatprep.subr.bf16.mxu1 %v355_v13 }
  0x42   :  { %p459_p0 = pnand %p458_p13, %p452_p10 }
  0x44   :  { %358 = vmatpush3.bf16.msra.mxu1 %v355_v13 }
  0x45   :  { %360 = vmatprep.subr.bf16.mxu1 %v359_v16 }
  0x48   :  { %362 = vmatpush3.bf16.msra.mxu1 %v359_v16 }
  0x49   :  { %364 = vmatprep.subr.bf16.mxu1 %v363_v19 }
  0x4c   :  { %366 = vmatpush3.bf16.msra.mxu1 %v363_v19 }
  0x4d   :  { %368 = vmatprep.subr.bf16.mxu1 %v367_v22 }
  0x50   :  { %370 = vmatpush3.bf16.msra.mxu1 %v367_v22 }
  0x51   :  { %372 = vmatprep.subr.bf16.mxu1 %v371_v25 }
  0x54   :  { %374 = vmatpush3.bf16.msra.mxu1 %v371_v25 }
  0x55   :  { %376 = vmatprep.subr.bf16.mxu1 %v375_v28 }
  0x58   :  { %378 = vmatpush3.bf16.msra.mxu1 %v375_v28 }
 0x110   :  { %v307_v30 = vpop.f32.mrb[0].mxu0 }
 0x111   :  { %v152_v31 = vadd.f32 %v307_v30, %v275_v29  ;;  %v146_v32 = vpop.f32.mrb[1].mxu0 }
 0x112   :  { %v147_v33 = vadd.f32 %v275_v29, %v146_v32 }
 0x113   :  { %v156_v35 = vmax.f32 %v152_v31, 0.0 }
 0x114   :  { %v155_v34 = vmax.f32 %v147_v33, 0.0 }
 0x116   :  { %340 = vmatprep.mubr.f32.mxu1 %v155_v34 }
 0x117   :  { %341 = vmatmul.mubr.f32.vlgmr.msra.gmra.mrb[0].mxu1 %v156_v35 }
 0x1ea   :  { %v342_v37 = vpop.f32.mrb[0].mxu1 }
 0x1eb   :  { %v252_v38 = vadd.f32 %v342_v37, %v278_v36  ;;  %v246_v39 = vpop.f32.mrb[1].mxu1 }
 0x1ec   :  { %v247_v40 = vadd.f32 %v278_v36, %v246_v39 }
 0x1ed   :  { %256 = vst [vmem:[#allocation8 + $0x8] sm:$0xff] %v252_v38 }
 0x1ee   :  { %255 = vst [vmem:[#allocation8] sm:$0xff] %v247_v40 }
 0x1ef   :  { %462 = shalt.err (!%p459_p0)
}
 0x1f0   :  { %s463_s4 = scalar_lea.hbm %s595_s5, 256 }
 0x1f1   :  { %p464_p1 = scmp.ne.s32.totalorder %s595_s5, %s463_s4  ;;  %p467_p2 = scmp.lt.u32.totalorder %s463_s4, %s595_s5 }
 0x1f3   :  { %p469_p3 = pnand %p467_p2, %p464_p1 }
 0x1f5   :  { %472 = shalt.err (!%p469_p3)
}
 0x1f6   :  { %268 = dma.vmem_to_hbm [thread:$0]  %s263_s10, 256, %s595_s5, [#allocation4], %s481_s30, %s481_s30, %s482_s6  }
 0x1f7   :  { %477 = dma.done.wait [#allocation4], 256  }
 0x1f8   :  { %478 = vsyncadd [#allocation4], 4294967040 }
 0x1f9   :  { %272 = vsyncpa [#allocation3], 1 }
 0x1fa   :  { %273 = vsyncpa [#allocation6], 1 }
 0x1fb   :  { %274 = vsyncpa [#allocation4], 1 }

</bundles_post_ra>
